<compile_context>
chip_gen: v7x
topology: tpu7x:2x2x1
jax: 0.10.0
libtpu: 0.0.40
codegen_flags: <defaults>
</compile_context>

<pallas_src>
import functools
import math

import jax
import jax.numpy as jnp
from jax.experimental import pallas as pl
from jax.experimental.pallas import tpu as pltpu


def _moe_kernel(flags_ref, x_ref, wu_ref, wd_ref, dw_ref, out_ref, *,
                de, r, compute_dtype):
    """One grid step = (token tile t, expert e): fused GLU+LoRA, accumulate."""
    t = pl.program_id(0)
    e = pl.program_id(1)

    @pl.when(e == 0)
    def _init():
        out_ref[...] = jnp.zeros_like(out_ref)

    @pl.when(flags_ref[t, e] > 0)           # skip experts with no routed tokens
    def _compute():
        x = x_ref[...]                      # [TT, H]  compute_dtype
        wu = wu_ref[0]                      # [H, Pu]  = [gate | up | A | pad]

        acts = jnp.dot(x, wu, preferred_element_type=jnp.float32)  # [TT, Pu] f32
        gate = acts[:, :de]
        up = acts[:, de:2 * de]
        xa = acts[:, 2 * de:2 * de + r]

        # routing weight of expert e for each token in the tile: lane-masked
        # reduce over the resident [TT, E] routing block (XLU, cheap).
        dw = dw_ref[...]                                            # [TT, E] f32
        lane = jax.lax.broadcasted_iota(jnp.int32, dw.shape, 1)
        w = jnp.sum(jnp.where(lane == e, dw, 0.0), axis=1, keepdims=True)

        # Fold routing weight before the down-projection (width De+r << H).
        h = jnp.concatenate([jax.nn.silu(gate) * up, xa], axis=-1)  # [TT, De+r]
        h = (w * h).astype(compute_dtype)

        wd = wd_ref[0]                      # [De+r, H] = [W_down ; scale*B_r]
        out_ref[...] += jnp.dot(h, wd, preferred_element_type=jnp.float32)


def sparse_mlp_with_lora(x, gating, W_gate, W_up, W_down, A_r, B_r, *,
                         moe_topk, lora_rank, lora_alpha,
                         compute_dtype=jnp.bfloat16, token_tile=None):
    """Forward pass of SparseMLPWithLoRA (world_size=1, rank=0)."""
    B, S, H = x.shape
    E, _, De = W_gate.shape
    r = lora_rank
    T = B * S
    lora_scale = float(lora_alpha) / float(lora_rank)

    xf = x.reshape(T, H).astype(jnp.float32)

    # --- routing (cheap glue, plain JAX, f32 as in the module) ---
    logits = xf @ gating.astype(jnp.float32)                     # [T, E]
    probs = jax.nn.softmax(logits, axis=-1)
    topk_vals, topk_idx = jax.lax.top_k(probs, moe_topk)
    weights = topk_vals / jnp.sum(topk_vals, axis=-1, keepdims=True)
    dense_w = jnp.sum(
        jax.nn.one_hot(topk_idx, E, dtype=jnp.float32) * weights[..., None],
        axis=1)                                                  # [T, E]

    # --- token tiling (bounds VMEM; scalable to production T) ---
    if token_tile is None:
        token_tile = max(16, min(512, (T // 16) * 16))
    TT = int(token_tile)
    T_pad = int(math.ceil(T / TT)) * TT
    if T_pad != T:
        xf = jnp.pad(xf, ((0, T_pad - T), (0, 0)))
        dense_w = jnp.pad(dense_w, ((0, T_pad - T), (0, 0)))
    num_tiles = T_pad // TT

    # --- pack per-expert weights into two wide RHS matrices ---
    Pu_raw = 2 * De + r
    Pu = ((Pu_raw + 127) // 128) * 128                           # lane-dense pad
    wu_packed = jnp.concatenate([W_gate, W_up, A_r], axis=-1)    # [E, H, 2De+r]
    if Pu != Pu_raw:
        wu_packed = jnp.pad(wu_packed, ((0, 0), (0, 0), (0, Pu - Pu_raw)))
    wu_packed = wu_packed.astype(compute_dtype)
    wd_packed = jnp.concatenate([W_down, lora_scale * B_r],
                                axis=1).astype(compute_dtype)    # [E, De+r, H]

    x_c = xf.astype(compute_dtype)

    # per (token-tile, expert) "any token routed here" flags (scalar prefetch).
    flags = (jnp.max(dense_w.reshape(num_tiles, TT, E), axis=1)
             > 0.0).astype(jnp.int32)                            # [tiles, E]

    kernel = functools.partial(_moe_kernel, de=De, r=r,
                               compute_dtype=compute_dtype)

    itm = jnp.dtype(compute_dtype).itemsize
    cost = pl.CostEstimate(
        flops=int(2 * T * (H * Pu + (De + r) * H) * moe_topk),
        transcendentals=int(T * De * moe_topk),
        bytes_accessed=int(T_pad * H * itm                      # activations
                           + E * H * Pu * itm                   # packed up/gate/A
                           + E * (De + r) * H * itm             # packed down/B
                           + T_pad * E * 4                      # routing weights
                           + T_pad * H * 4))                    # f32 output

    out = pl.pallas_call(
        kernel,
        out_shape=jax.ShapeDtypeStruct((T_pad, H), jnp.float32),
        grid_spec=pltpu.PrefetchScalarGridSpec(
            num_scalar_prefetch=1,
            grid=(num_tiles, E),                                 # experts last
            in_specs=[
                pl.BlockSpec((TT, H), lambda t, e, f: (t, 0)),          # tokens
                pl.BlockSpec((1, H, Pu), lambda t, e, f: (e, 0, 0)),    # up/gate/A
                pl.BlockSpec((1, De + r, H), lambda t, e, f: (e, 0, 0)),  # down/B
                pl.BlockSpec((TT, E), lambda t, e, f: (t, 0)),          # routing
            ],
            out_specs=pl.BlockSpec((TT, H), lambda t, e, f: (t, 0)),
        ),
        compiler_params=pltpu.CompilerParams(
            dimension_semantics=("parallel", "arbitrary"),
            vmem_limit_bytes=48 * 1024 * 1024),
        cost_estimate=cost,
    )(flags, x_c, wu_packed, wd_packed, dense_w)

    return out[:T].reshape(B, S, H).astype(x.dtype)


def _reference_f32(x, gating, W_gate, W_up, W_down, A_r, B_r, *,
                   moe_topk, lora_rank, lora_alpha):
    """Pure-JAX f32 reference mirroring the PyTorch forward semantics."""
    B, S, H = x.shape
    E = gating.shape[-1]
    xf = x.reshape(B * S, H).astype(jnp.float32)
    logits = xf @ gating.astype(jnp.float32)
    probs = jax.nn.softmax(logits, axis=-1)
    tv, ti = jax.lax.top_k(probs, moe_topk)
    w = tv / jnp.sum(tv, axis=-1, keepdims=True)
    dense_w = jnp.sum(jax.nn.one_hot(ti, E, dtype=jnp.float32) * w[..., None],
                      axis=1)
    scale = float(lora_alpha) / float(lora_rank)
    out = jnp.zeros_like(xf)
    for e in range(E):
        g = jax.nn.silu(xf @ W_gate[e])
        u = xf @ W_up[e]
        y = (g * u) @ W_down[e] + scale * ((xf @ A_r[e]) @ B_r[e])
        out = out + dense_w[:, e:e + 1] * y
    return out.reshape(B, S, H).astype(x.dtype)


if __name__ == "__main__":
    # Small, module-consistent shapes: [batch, seq, hidden].
    B, S, H = 2, 16, 128
    ffh = 256
    num_experts = 4
    expert_size = ffh // num_experts          # De = 64
    moe_topk = 2
    lora_rank = 8
    lora_alpha = lora_rank                    # default: alpha = rank

    key = jax.random.PRNGKey(0)
    keys = jax.random.split(key, 8)

    def normal(k, shape, fan_in):
        return jax.random.normal(k, shape, jnp.float32) * jnp.sqrt(2.0 / fan_in)

    W_up = normal(keys[0], (num_experts, H, expert_size), H)
    W_gate = normal(keys[1], (num_experts, H, expert_size), H)
    W_down = normal(keys[2], (num_experts, expert_size, H), expert_size)
    A_r = normal(keys[3], (num_experts, H, lora_rank), H)
    B_r = normal(keys[4], (num_experts, lora_rank, H), lora_rank)
    gating = jax.random.normal(keys[5], (H, num_experts), jnp.float32)
    x = jax.random.normal(keys[6], (B, S, H), jnp.float32)

    ref = _reference_f32(x, gating, W_gate, W_up, W_down, A_r, B_r,
                         moe_topk=moe_topk, lora_rank=lora_rank,
                         lora_alpha=lora_alpha)

    # f32 path: matches the module's float32 math (token_tile=16 -> 2 tiles,
    # exercises both grid axes and the padding/skip logic).
    out_f32 = sparse_mlp_with_lora(
        x, gating, W_gate, W_up, W_down, A_r, B_r,
        moe_topk=moe_topk, lora_rank=lora_rank, lora_alpha=lora_alpha,
        compute_dtype=jnp.float32, token_tile=16)
    out_f32 = jax.block_until_ready(out_f32)
    assert out_f32.shape == (B, S, H) and out_f32.dtype == x.dtype
    assert jnp.allclose(out_f32, ref, atol=2e-3, rtol=2e-3), \
        "f32 kernel mismatch vs reference"

    # bf16-MXU path (recommended perf configuration): bf16 inputs, f32 accum.
    out_bf16 = sparse_mlp_with_lora(
        x, gating, W_gate, W_up, W_down, A_r, B_r,
        moe_topk=moe_topk, lora_rank=lora_rank, lora_alpha=lora_alpha,
        compute_dtype=jnp.bfloat16, token_tile=16)
    out_bf16 = jax.block_until_ready(out_bf16)
    assert out_bf16.shape == (B, S, H) and out_bf16.dtype == x.dtype
    max_err = float(jnp.max(jnp.abs(out_bf16 - ref)))
    assert max_err < 1e-1, f"bf16 kernel too far from f32 reference: {max_err}"

    print("KERNEL_OK")
</pallas_src>

<mosaic_0001>
module attributes {stable_mosaic.version = 11 : i64} {
  func.func @_moe_kernel(%arg0: i32, %arg1: i32, %arg2: memref<2x4xi32, #tpu.memory_space<smem>>, %arg3: memref<16x128xf32, #tpu.memory_space<vmem>>, %arg4: memref<1x128x256xf32, #tpu.memory_space<vmem>>, %arg5: memref<1x72x128xf32, #tpu.memory_space<vmem>>, %arg6: memref<16x4xf32, #tpu.memory_space<vmem>>, %arg7: memref<16x128xf32, #tpu.memory_space<vmem>>) attributes {dimension_semantics = [#tpu.dimension_semantics<parallel>, #tpu.dimension_semantics<arbitrary>], iteration_bounds = array<i64: 2, 4>, scalar_prefetch = 1 : i64, scratch_operands = 0 : i64, tpu.core_type = #tpu.core_type<tc>, window_params = [{transform_indices = @transform_0, window_bounds = array<i64: 16, 128>}, {transform_indices = @transform_1, window_bounds = array<i64: 1, 128, 256>}, {transform_indices = @transform_2, window_bounds = array<i64: 1, 72, 128>}, {transform_indices = @transform_3, window_bounds = array<i64: 16, 4>}, {transform_indices = @transform_4, window_bounds = array<i64: 16, 128>}]} {
    %c0_i32 = arith.constant 0 : i32
    %0 = arith.cmpi eq, %arg1, %c0_i32 : i32
    %1 = arith.extui %0 : i1 to i32
    %c0_i32_0 = arith.constant 0 : i32
    %2 = arith.cmpi ne, %1, %c0_i32_0 : i32
    scf.if %2 {
      %cst = arith.constant 0.000000e+00 : f32
      %9 = vector.broadcast %cst : f32 to vector<16x128xf32>
      %c0 = arith.constant 0 : index
      %c0_3 = arith.constant 0 : index
      %10 = vector.load %arg7[%c0, %c0_3] : memref<16x128xf32, #tpu.memory_space<vmem>>, vector<16x128xf32>
      tpu.vector_store %arg7[%c0, %c0_3], %9 {strides = array<i32>} : memref<16x128xf32, #tpu.memory_space<vmem>>, vector<16x128xf32>,
    } else {
    }
    %3 = arith.index_cast %arg0 : i32 to index
    %4 = arith.index_cast %arg1 : i32 to index
    %5 = memref.load %arg2[%3, %4] : memref<2x4xi32, #tpu.memory_space<smem>>
    %c0_i32_1 = arith.constant 0 : i32
    %6 = arith.cmpi sgt, %5, %c0_i32_1 : i32
    %7 = arith.extui %6 : i1 to i32
    %c0_i32_2 = arith.constant 0 : i32
    %8 = arith.cmpi ne, %7, %c0_i32_2 : i32
    scf.if %8 {
      %c0 = arith.constant 0 : index
      %c0_3 = arith.constant 0 : index
      %9 = vector.load %arg3[%c0, %c0_3] : memref<16x128xf32, #tpu.memory_space<vmem>>, vector<16x128xf32>
      %c0_4 = arith.constant 0 : index
      %c0_5 = arith.constant 0 : index
      %c0_6 = arith.constant 0 : index
      %10 = vector.load %arg4[%c0_4, %c0_5, %c0_6] : memref<1x128x256xf32, #tpu.memory_space<vmem>>, vector<1x128x256xf32>
      %11 = vector.shape_cast %10 : vector<1x128x256xf32> to vector<128x256xf32>
      %cst = arith.constant dense<0.000000e+00> : vector<16x256xf32>
      %12 = tpu.matmul %9, %11, %cst {dimension_numbers = #tpu.dot_dimension_numbers<[1], [0], [0], [1], [0, 0, 1, 1], [], []>} : vector<16x128xf32>, vector<128x256xf32>, vector<16x256xf32> -> vector<16x256xf32>
      %13 = vector.extract_strided_slice %12 {offsets = [0, 0], sizes = [16, 64], strides = [1, 1]} : vector<16x256xf32> to vector<16x64xf32>
      %14 = vector.extract_strided_slice %12 {offsets = [0, 64], sizes = [16, 64], strides = [1, 1]} : vector<16x256xf32> to vector<16x64xf32>
      %15 = vector.extract_strided_slice %12 {offsets = [0, 128], sizes = [16, 8], strides = [1, 1]} : vector<16x256xf32> to vector<16x8xf32>
      %c0_7 = arith.constant 0 : index
      %c0_8 = arith.constant 0 : index
      %16 = vector.load %arg6[%c0_7, %c0_8] : memref<16x4xf32, #tpu.memory_space<vmem>>, vector<16x4xf32>
      %17 = tpu.iota {dimensions = array<i32: 1>} : vector<16x4xi32>
      %18 = vector.broadcast %arg1 : i32 to vector<16x4xi32>
      %19 = arith.cmpi eq, %17, %18 : vector<16x4xi32>
      %cst_9 = arith.constant 0.000000e+00 : f32
      %20 = vector.broadcast %cst_9 : f32 to vector<16x4xf32>
      %21 = arith.select %19, %16, %20 : vector<16x4xi1>, vector<16x4xf32>
      %cst_10 = arith.constant dense<0.000000e+00> : vector<16xf32>
      %22 = vector.multi_reduction <add>, %21, %cst_10 [1] : vector<16x4xf32> to vector<16xf32>
      %23 = vector.shape_cast %22 : vector<16xf32> to vector<16x1xf32>
      %24 = arith.negf %13 : vector<16x64xf32>
      %25 = math.exp %24 : vector<16x64xf32>
      %cst_11 = arith.constant 1.000000e+00 : f32
      %26 = vector.broadcast %cst_11 : f32 to vector<16x64xf32>
      %27 = arith.addf %26, %25 : vector<16x64xf32>
      %28 = arith.divf %26, %27 : vector<16x64xf32>
      %29 = arith.mulf %13, %28 : vector<16x64xf32>
      %30 = arith.mulf %29, %14 : vector<16x64xf32>
      %31 = tpu.concatenate %30, %15 in 1 : vector<16x64xf32>, vector<16x8xf32> -> vector<16x72xf32>
      %32 = vector.broadcast %23 : vector<16x1xf32> to vector<16x72xf32>
      %33 = arith.mulf %32, %31 : vector<16x72xf32>
      %c0_12 = arith.constant 0 : index
      %c0_13 = arith.constant 0 : index
      %c0_14 = arith.constant 0 : index
      %34 = vector.load %arg5[%c0_12, %c0_13, %c0_14] : memref<1x72x128xf32, #tpu.memory_space<vmem>>, vector<1x72x128xf32>
      %35 = vector.shape_cast %34 : vector<1x72x128xf32> to vector<72x128xf32>
      %c0_15 = arith.constant 0 : index
      %c0_16 = arith.constant 0 : index
      %36 = vector.load %arg7[%c0_15, %c0_16] : memref<16x128xf32, #tpu.memory_space<vmem>>, vector<16x128xf32>
      %cst_17 = arith.constant dense<0.000000e+00> : vector<16x128xf32>
      %37 = tpu.matmul %33, %35, %cst_17 {dimension_numbers = #tpu.dot_dimension_numbers<[1], [0], [0], [1], [0, 0, 1, 1], [], []>} : vector<16x72xf32>, vector<72x128xf32>, vector<16x128xf32> -> vector<16x128xf32>
      %38 = arith.addf %36, %37 : vector<16x128xf32>
      %c0_18 = arith.constant 0 : index
      %c0_19 = arith.constant 0 : index
      %39 = vector.load %arg7[%c0_18, %c0_19] : memref<16x128xf32, #tpu.memory_space<vmem>>, vector<16x128xf32>
      tpu.vector_store %arg7[%c0_18, %c0_19], %38 {strides = array<i32>} : memref<16x128xf32, #tpu.memory_space<vmem>>, vector<16x128xf32>,
    } else {
    }
    return
  }
  func.func @transform_0(%arg0: i32, %arg1: i32, %arg2: memref<2x4xi32, #tpu.memory_space<smem>>) -> (i32, i32) {
    %c0_i32 = arith.constant 0 : i32
    %c0_i32_0 = arith.constant 0 : i32
    return %arg0, %c0_i32 : i32, i32
  }
  func.func @transform_1(%arg0: i32, %arg1: i32, %arg2: memref<2x4xi32, #tpu.memory_space<smem>>) -> (i32, i32, i32) {
    %c0_i32 = arith.constant 0 : i32
    %c0_i32_0 = arith.constant 0 : i32
    %c0_i32_1 = arith.constant 0 : i32
    return %arg1, %c0_i32, %c0_i32_0 : i32, i32, i32
  }
  func.func @transform_2(%arg0: i32, %arg1: i32, %arg2: memref<2x4xi32, #tpu.memory_space<smem>>) -> (i32, i32, i32) {
    %c0_i32 = arith.constant 0 : i32
    %c0_i32_0 = arith.constant 0 : i32
    %c0_i32_1 = arith.constant 0 : i32
    return %arg1, %c0_i32, %c0_i32_0 : i32, i32, i32
  }
  func.func @transform_3(%arg0: i32, %arg1: i32, %arg2: memref<2x4xi32, #tpu.memory_space<smem>>) -> (i32, i32) {
    %c0_i32 = arith.constant 0 : i32
    %c0_i32_0 = arith.constant 0 : i32
    return %arg0, %c0_i32 : i32, i32
  }
  func.func @transform_4(%arg0: i32, %arg1: i32, %arg2: memref<2x4xi32, #tpu.memory_space<smem>>) -> (i32, i32) {
    %c0_i32 = arith.constant 0 : i32
    %c0_i32_0 = arith.constant 0 : i32
    return %arg0, %c0_i32 : i32, i32
  }
}

</mosaic_0001>

<bundles_post_ra>
// kernel: tpu_custom_call.1
= control target key start
LH: loop header
LB: loop body
LE: loop exit
PB: predicated region body
PF: predicated region fallthrough
CT: control target
= control target key end

     0   :  { %s1583_s0 = inlined_call_operand.vmem [shape: s32[2,4], index: 0, kind: input, shape index: {}]   ;;  %s1584_s1 = inlined_call_operand.vmem [shape: f32[32,128], index: 1, kind: input, shape index: {}]   ;;  %s1585_s2 = inlined_call_operand.hbm [shape: f32[4,128,256], index: 2, kind: input, shape index: {}]   ;;  %s1586_s3 = inlined_call_operand.hbm [shape: f32[4,72,128], index: 3, kind: input, shape index: {}]   ;;  %s1587_s4 = inlined_call_operand.vmem [shape: f32[32,4], index: 4, kind: input, shape index: {}]   ;;  %s1588_s5 = inlined_call_operand.hbm [shape: f32[32,128], index: 5, kind: output, shape index: {}]  }
   0x1   :  { %1595 = sst [smem:[#allocation19_spill]] %s1585_s2  ;;  %s10_s20 = sshll.u32 %s1583_s0, 4  ;;  %s11_s20 = int_to_ptr.vmem [resolvable:$true] %s10_s20 }
   0x2   :  { %s980_s21 = scalar_lea.vmem %s11_s20, 32  ;;  %p985_p1 = scmp.lt.s32.totalorder %s11_s20, %s11_s20 }
   0x3   :  { %p981_p0 = scmp.ne.s32.totalorder %s11_s20, %s980_s21  ;;  %p986_p2 = scmp.lt.s32.totalorder %s980_s21, %s980_s21 }
   0x5   :  { %p987_p3 = por %p986_p2, %p985_p1 }
   0x7   :  { %p988_p4 = pnand %p987_p3, %p981_p0 }
   0x9   :  { %991 = shalt.err (!%p988_p4)  }
   0xa   :  { %s1182_s22 = smov [#allocation3]  }
   0xb   :  { %13 = dma.vmem_to_smem %s11_s20, 32, %s1182_s22, [#allocation2] }
   0xc   :  { %1124 = dma.done.wait [#allocation2], 32 }
   0xd   :  { %1125 = vsyncadd [#allocation2], 4294967264 }
   0xe   :  { %15 = sfence }
   0xf   :  { %16 = vsyncpa [#allocation5], 0 }
  0x10   :  { %18 = vsyncpa [#allocation5 + $0x1], 0 }
  0x11   :  { %19 = vsyncpa [#allocation8], 0 }
  0x12   :  { %21 = vsyncpa [#allocation8 + $0x1], 0 }
  0x13   :  { %22 = vsyncpa [#allocation6], 0 }
  0x14   :  { %24 = vsyncpa [#allocation6 + $0x1], 0  ;;  %s1228_s0 = smov 0   ;;  %s1230_s23 = smov 0  }
  0x15   :  { %s1232_s24 = smov 0   ;;  %s1234_s25 = smov 0  }
  0x16   :  { %s1236_s26 = smov 0   ;;  %s1238_s27 = smov 0  }
  0x17   :  { %s1240_s28 = smov 0   ;;  %s1242_s29 = smov 0  }
  0x18   :  { %s1244_s30 = smov 0   ;;  %s1246_s6 = smov 0  }
  0x19   :  { %s1248_s7 = smov 0  }
  0x1a LB: > { %1596 = sst [smem:[#allocation14_spill]] %s1160_s27  ;;  %s743_s8 = sadd.s32 4294967295, %s1180_s7   ;;  %s1180_s7 = sphi %s1248_s7, %s30_s7   ;;  %s1176_s6 = sphi %s1246_s6, %s1617_s6   ;;  %s1172_s30 = sphi %s1244_s30, %s1624_s30   ;;  %s1168_s29 = sphi %s1242_s29, %s1615_s29   ;;  %s1164_s28 = sphi %s1240_s28, %s1623_s28   ;;  %s1160_s27 = sphi %s1238_s27, %s1614_s27   ;;  %s1156_s26 = sphi %s1236_s26, %s1622_s26   ;;  %s1152_s25 = sphi %s1234_s25, %s1621_s25   ;;  %s1148_s24 = sphi %s1232_s24, %s1620_s24   ;;  %s1144_s23 = sphi %s1230_s23, %s1619_s23   ;;  %s1140_s0 = sphi %s1228_s0, %s1618_s0  }
  0x1b   : > { %1597 = sst [smem:[#allocation15_spill]] %s1176_s6  ;;  %s744_s9 = sadd.s32 4294967294, %s1180_s7  }
  0x1c   : > { %s39_s10 = sadd.s32 1, %s1172_s30  ;;  %s42_s11 = sadd.s32 1, %s1176_s6 }
  0x1d   : > { %p40_p5 = scmp.ge.s32.totalorder %s39_s10, 4  ;;  %s75_s12 = sadd.s32 1, %s1160_s27 }
  0x1e   : > { %p82_p6 = scmp.ne.s32.totalorder %s1160_s27, %s1156_s26  ;;  %p83_p7 = scmp.eq.s32.totalorder %s1180_s7, 0 }
  0x1f   : > { %s1626_s10 = smov (%p40_p5, %s39_s10), 0  ;;  %s1628_s11 = smov (!%p40_p5, %s42_s11), %s1176_s6 }
  0x20   : > { %1598 = sst [smem:[#allocation16_spill]] %s1626_s10  ;;  %s72_s13 = ssub.s32 %s1172_s30, %s1626_s10 }
  0x21   : > { %p1294_p8 = por %p83_p7, %p82_p6  ;;  %p44_p9 = scmp.ge.s32.totalorder %s1628_s11, 2 }
  0x22   : > { %p73_p10 = scmp.eq.s32.totalorder %s72_s13, 0  ;;  %p88_p11 = scmp.ne.s32.totalorder %s1156_s26, %s1152_s25 }
  0x23   : > { %p89_p12 = scmp.eq.s32.totalorder %s743_s8, 0  ;;  %s1630_s11 = smov (%p44_p9, %s1628_s11), 0 }
  0x24   : > { %1600 = sst [smem:[#allocation17_spill]] %s1630_s11  ;;  %s150_s17 = ssub.s32 %s1176_s6, %s1630_s11 }
  0x25   : > { %s1302_s15 = scalar_select %p73_p10, %s1160_s27, %s75_s12  }
  0x26   : > { %p1304_p13 = por %p89_p12, %p88_p11  ;;  %p151_p0 = scmp.eq.s32.totalorder %s150_s17, 0 }
  0x27   : > { %1601 = sst [smem:[#allocation18_spill]] %s1302_s15  ;;  %s153_s18 = sadd.s32 1, %s1148_s24 }
  0x28   : > { %s1602_s16 = scalar_select %p1304_p13, 1, 0 }
  0x29   : > { %p163_p1 = scmp.ne.s32.totalorder %s1148_s24, %s1144_s23  ;;  %p164_p2 = scmp.eq.s32.totalorder %s743_s8, 7 }
  0x2a   : > { %s1314_s19 = scalar_select %p151_p0, %s1148_s24, %s153_s18  }
  0x2b   : > { %p1316_p3 = por %p164_p2, %p163_p1  ;;  %p169_p4 = scmp.ne.s32.totalorder %s1144_s23, %s1140_s0 }
  0x2c   : > { %p170_p5 = scmp.eq.s32.totalorder %s744_s9, 7  ;;  %p872_p6 = scmp.lt.s32.totalorder %s1180_s7, 8 }
  0x2d   : > { %s1603_s20 = scalar_select %p1316_p3, 1, 0 }
  0x2e   : > { %s1324_s21 = sand.u32 1, %s1160_s27   ;;  %p1326_p7 = por %p170_p5, %p169_p4 }
  0x2f   : > { %s747_s25 = sshll.u32 %s1324_s21, 8  ;;  %s770_s12 = sshll.u32 %s1172_s30, 12 }
  0x30   : > { %s1604_s22 = scalar_select %p1326_p7, 1, 0 }
  0x31   : > { %s1605_s2 = sld [smem:[#allocation19_spill]]  ;;  %s203_s9 = scalar_lea.vmem [#allocation4], %s747_s25 }
  0x32   : > { %s210_s18 = sshll.u32 %s203_s9, 4  ;;  %p1339_p9 = pnand %p872_p6, %p1294_p8  ;;  %s1343_s18 = int_to_ptr.vmem [resolvable:$true] %s210_s18 }
  0x33   : > { %s200_s10 = scalar_lea.sflag [#allocation5], %s1324_s21 }
  0x34   : > { %p994_p11 = pneg %p1339_p9 }
  0x37   : > { %s1335_s17 = scalar_lea.hbm %s1605_s2, %s770_s12  ;;  %s997_s14 = scalar_lea.hbm %s1605_s2, 16384 }
  0x38   : > { %s992_s6 = scalar_lea.hbm %s1335_s17, 4096  ;;  %p998_p8 = scmp.lt.u32.totalorder %s1335_s17, %s1605_s2 }
  0x39   : > { %p993_p10 = scmp.ne.s32.totalorder %s1335_s17, %s992_s6  ;;  %p999_p1 = scmp.lt.u32.totalorder %s997_s14, %s992_s6 }
  0x3a   : > { %p1001_p4 = scmp.lt.u32.totalorder %s992_s6, %s1335_s17 }
  0x3b   : > { %p995_p12 = pnand %p994_p11, %p993_p10  ;;  %p1000_p2 = por %p999_p1, %p998_p8 }
  0x3d   : > { %p996_p0 = pneg %p995_p12  ;;  %p1002_p5 = por %p1001_p4, %p1000_p2 }
  0x3f   : > { %p1003_p6 = pnand %p1002_p5, %p996_p0 }
  0x41   : > { %1006 = shalt.err (!%p1003_p6)
}
  0x42   : > { %s1007_s9 = scalar_lea.vmem %s1343_s18, 4096  ;;  %s1183_s25 = smov [#allocation4]  }
  0x43   : > { %p1008_p10 = scmp.ne.s32.totalorder %s1343_s18, %s1007_s9  ;;  %s1012_s12 = sshll.u32 %s1183_s25, 4  ;;  %s1013_s12 = int_to_ptr.vmem [resolvable:$false] %s1012_s12 }
  0x44   : > { %s1014_s8 = scalar_lea.vmem %s1013_s12, 8192  ;;  %p1015_p3 = scmp.lt.s32.totalorder %s1343_s18, %s1013_s12 }
  0x45   : > { %p1010_p12 = pnand %p1008_p10, %p994_p11  ;;  %p1016_p8 = scmp.lt.s32.totalorder %s1014_s8, %s1007_s9 }
  0x47   : > { %p1011_p7 = pneg %p1010_p12  ;;  %p1017_p1 = por %p1016_p8, %p1015_p3 }
  0x49   : > { %p1018_p2 = pnand %p1017_p1, %p1011_p7 }
  0x4b   : > { %1021 = shalt.err (!%p1018_p2)
}
  0x4c   : > { %s1184_s6 = smov 256   ;;  %s1185_s14 = smov 16  }
  0x4d   : > { %864 = dma.hbm_to_vmem [thread:$0]  (!%p1339_p9), %s1335_s17, 4096, %s1343_s18, %s200_s10, %s1184_s6, %s1184_s6, %s1185_s14  }
  0x4e   : > { %p751_p0 = scmp.ge.s32.totalorder %s1180_s7, 1  ;;  %p248_p4 = scmp.lt.s32.totalorder %s1180_s7, 9 }
  0x4f   : > { %s852_s13 = smul.u32 72, %s1324_s21  ;;  %s221_s10 = scalar_lea.sflag [#allocation8], %s1324_s21 }
  0x50   : > { %p1376_p3 = pnand %p751_p0, %p248_p4  ;;  %s853_s25 = smul.u32 1152, %s1172_s30 }
  0x51   : > { %s224_s15 = scalar_lea.vmem [#allocation7], %s852_s13  ;;  %s1027_s14 = scalar_lea.hbm %s1586_s3, 4608 }
  0x52   : > { %s1384_s2 = scalar_lea.hbm %s1586_s3, %s853_s25  ;;  %s231_s27 = sshll.u32 %s224_s15, 4  ;;  %s1386_s27 = int_to_ptr.vmem [resolvable:$true] %s231_s27 }
  0x53   : > { %s1022_s17 = scalar_lea.hbm %s1384_s2, 1152  ;;  %p1028_p10 = scmp.lt.u32.totalorder %s1384_s2, %s1586_s3 }
  0x54   : > { %p1023_p7 = scmp.ne.s32.totalorder %s1384_s2, %s1022_s17  ;;  %p1029_p12 = scmp.lt.u32.totalorder %s1027_s14, %s1022_s17 }
  0x55   : > { %p1031_p1 = scmp.lt.u32.totalorder %s1022_s17, %s1384_s2 }
  0x56   : > { %p1025_p5 = pnand %p1023_p7, %p994_p11  ;;  %p1030_p8 = por %p1029_p12, %p1028_p10 }
  0x58   : > { %p1026_p6 = pneg %p1025_p5  ;;  %p1032_p2 = por %p1031_p1, %p1030_p8 }
  0x5a   : > { %p1033_p0 = pnand %p1032_p2, %p1026_p6 }
  0x5c   : > { %1036 = shalt.err (!%p1033_p0)
}
  0x5d   : > { %s1037_s15 = scalar_lea.vmem %s1386_s27, 1152  ;;  %s1186_s13 = smov [#allocation7]  }
  0x5e   : > { %p1038_p4 = scmp.ne.s32.totalorder %s1386_s27, %s1037_s15  ;;  %s1042_s8 = sshll.u32 %s1186_s13, 4  ;;  %s1043_s8 = int_to_ptr.vmem [resolvable:$false] %s1042_s8 }
  0x5f   : > { %s1044_s18 = scalar_lea.vmem %s1043_s8, 2304  ;;  %p1045_p13 = scmp.lt.s32.totalorder %s1386_s27, %s1043_s8 }
  0x60   : > { %p1040_p7 = pnand %p1038_p4, %p994_p11  ;;  %p1046_p10 = scmp.lt.s32.totalorder %s1044_s18, %s1037_s15 }
  0x62   : > { %p1041_p5 = pneg %p1040_p7  ;;  %p1047_p12 = por %p1046_p10, %p1045_p13 }
  0x64   : > { %p1048_p8 = pnand %p1047_p12, %p1041_p5 }
  0x66   : > { %1051 = shalt.err (!%p1048_p8)
}
  0x67   : > { %s1187_s17 = smov 128   ;;  %s1188_s6 = smov 8  }
  0x68   : > { %867 = dma.hbm_to_vmem [thread:$0]  (!%p1339_p9), %s1384_s2, 1152, %s1386_s27, %s221_s10, %s1187_s17, %s1187_s17, %s1188_s6  }
  0x69   : > { %252 = sbr.rel (%p1376_p3) target bundleno = 754 (0x2f2), region = 36  ;;  %s254_s14 = sand.u32 (!%p1376_p3), 1, %s1156_s26  }
  0x6a   : > { %s752_s25 = sshll.u32 (!%p1376_p3), %s254_s14, 8  ;;  %s255_s12 = scalar_lea.sflag (!%p1376_p3), [#allocation5], %s254_s14 }
  0x6b   : > { %s1417_s15 = scalar_lea.vmem (!%p1376_p3), [#allocation4], %s752_s25  ;;  %p1608_p13 = scmp.ne.s32.totalorder (!%p1376_p3), %s1602_s16, 0 }
  0x70   : > { %1127 = dma.done.wait (%p1608_p13), %s255_s12, 4096  }
  0x71   : > { %1129 = vsyncadd (%p1608_p13), %s255_s12, 4294963200  ;;  %s854_s13 = smul.u32 72, %s254_s14  ;;  %s264_s11 = scalar_lea.sflag [#allocation8], %s254_s14 }
  0x73   : > { %s1423_s21 = scalar_lea.vmem [#allocation7], %s854_s13 }
  0x74   : > { %1131 = dma.done.wait (%p1608_p13), %s264_s11, 1152  }
  0x75   : > { %1133 = vsyncadd (%p1608_p13), %s264_s11, 4294966144  ;;  %s304_s2 = sand.u32 1, %s1144_s23   ;;  %s754_s27 = sshll.u32 %s1168_s29, 1 }
  0x76   : > { %s753_s9 = sshll.u32 %s304_s2, 4  ;;  %p308_p9 = scmp.lt.s32.totalorder %s754_s27, 3 }
  0x77   : > { %s1443_s25 = scalar_lea.vmem [#allocation9], %s753_s9  ;;  %p758_p11 = scmp.ne.s32.totalorder %s1164_s28, 0 }
  0x78   : > { %s1632_s27 = smov (!%p308_p9, %s754_s27), 3  ;;  %v1189_v0 = vmov (!%p758_p11), 0.0  }
  0x79   : > { %s755_s10 = sshll.u32 %s1632_s27, 3  ;;  %323 = sbr.rel (%p758_p11) target bundleno = 128 (0x80), region = 48  ;;  %324 = vst [vmem:[%s1443_s25] sm:$0xff] (!%p758_p11), %v1189_v0  ;;  %325 = vst [vmem:[%s1443_s25 + $0x8] sm:$0xff] (!%p758_p11), %v1189_v0 }
  0x7a   : > { %s1436_s17 = scalar_lea.vmem %s1584_s1, %s755_s10  ;;  %s1441_s16 = scalar_lea.vmem %s1587_s4, %s755_s10 }
  0x80 PF: > { %s326_s12 = sshra.s32 %s1164_s28, 7  ;;  %s331_s13 = sand.u32 127, %s1164_s28 }
  0x81   : > { %s328_s11 = sadd.s32 %s1168_s29, %s326_s12 }
  0x82   : > { %s759_s27 = sshll.u32 %s328_s11, 7 }
  0x83   : > { %s332_s10 = sadd.s32 %s759_s27, %s331_s13 }
  0x84   : > { %s333_s8 = sld [smem:[#allocation3 + %s332_s10]] }
  0x8a   : > { %p760_p3 = scmp.le.s32.totalorder %s333_s8, 0 }
  0x8b   : > { %v341_v1 = vld [vmem:[%s1417_s15 + $0x8] sm:$0xff] (!%p760_p3)  ;;  %v343_v2 = vld [vmem:[%s1417_s15 + $0x18] sm:$0xff] (!%p760_p3)  ;;  %v340_v3 = vld [vmem:[%s1417_s15] sm:$0xff] (!%p760_p3)  ;;  %v1190_v8 = vmov (!%p760_p3), 0.0   ;;  %v451_v9 = vlaneseq (!%p760_p3)  ;;  %v453_v23 = vstv (!%p760_p3), %s1164_s28  ;;  %vm457_vm1 = vcmask (!%p760_p3), 31744   ;;  %s1191_s28 = smov (!%p760_p3), 64  }
  0x8c   : > { %337 = sbr.rel (%p760_p3) target bundleno = 728 (0x2d8), region = 52  ;;  %v804_v4 = vpack.c.bf16 (!%p760_p3), %v343_v2, %v341_v1  ;;  %v342_v5 = vld [vmem:[%s1417_s15 + $0x10] sm:$0xff] (!%p760_p3)  ;;  %v345_v6 = vld [vmem:[%s1417_s15 + $0x28] sm:$0xff] (!%p760_p3)  ;;  %v347_v7 = vld [vmem:[%s1417_s15 + $0x38] sm:$0xff] (!%p760_p3)  ;;  %436 = vmatprep.mubr.f32.mxu0 (!%p760_p3), %v1190_v8  ;;  %vm496_vm2 = vcmask (!%p760_p3), 523264   ;;  %vm512_vm3 = vcmask (!%p760_p3), 588800  }
  0x8d   : > { %v806_v10 = vpack.c.bf16 (!%p760_p3), %v342_v5, %v340_v3  ;;  %v808_v11 = vpack.c.bf16 (!%p760_p3), %v347_v7, %v345_v6  ;;  %v344_v12 = vld [vmem:[%s1417_s15 + $0x20] sm:$0xff] (!%p760_p3)  ;;  %v346_v13 = vld [vmem:[%s1417_s15 + $0x30] sm:$0xff] (!%p760_p3)  ;;  %v349_v14 = vld [vmem:[%s1417_s15 + $0x48] sm:$0xff] (!%p760_p3)  ;;  %v452_v20 = vand.u32 (!%p760_p3), 127, %v451_v9 }
  0x8e   : > { %805 = vmatprep.subr.bf16.mxu0 (!%p760_p3), %v804_v4  ;;  %v351_v15 = vld [vmem:[%s1417_s15 + $0x58] sm:$0xff] (!%p760_p3)  ;;  %v810_v16 = vpack.c.bf16 (!%p760_p3), %v346_v13, %v344_v12  ;;  %v348_v18 = vld [vmem:[%s1417_s15 + $0x40] sm:$0xff] (!%p760_p3)  ;;  %v350_v19 = vld [vmem:[%s1417_s15 + $0x50] sm:$0xff] (!%p760_p3) }
  0x8f   : > { %807 = vmatpush1.bf16.msra.mxu0 (!%p760_p3), %v806_v10  ;;  %v812_v17 = vpack.c.bf16 (!%p760_p3), %v351_v15, %v349_v14  ;;  %v353_v21 = vld [vmem:[%s1417_s15 + $0x68] sm:$0xff] (!%p760_p3)  ;;  %v355_v22 = vld [vmem:[%s1417_s15 + $0x78] sm:$0xff] (!%p760_p3)  ;;  %v814_v24 = vpack.c.bf16 (!%p760_p3), %v350_v19, %v348_v18  ;;  %v352_v26 = vld [vmem:[%s1417_s15 + $0x60] sm:$0xff] (!%p760_p3)  ;;  %vm1469_vm0 = vcmp.eq.s32.totalorder (!%p760_p3), %v452_v20, %v453_v23 }
  0x90   : > { %809 = vmatprep.subr.bf16.mxu0 (!%p760_p3), %v808_v11  ;;  %v816_v25 = vpack.c.bf16 (!%p760_p3), %v355_v22, %v353_v21  ;;  %v354_v27 = vld [vmem:[%s1417_s15 + $0x70] sm:$0xff] (!%p760_p3)  ;;  %v357_v29 = vld [vmem:[%s1417_s15 + $0x88] sm:$0xff] (!%p760_p3)  ;;  %v359_v30 = vld [vmem:[%s1417_s15 + $0x98] sm:$0xff] (!%p760_p3) }
  0x91   : > { %v449_v31 = vld [vmem:[%s1441_s16] sm:$0xff] (!%p760_p3)  ;;  %v450_v32 = vld [vmem:[%s1441_s16 + $0x8] sm:$0xff] (!%p760_p3)  ;;  %v818_v33 = vpack.c.bf16 (!%p760_p3), %v354_v27, %v352_v26  ;;  %v820_v36 = vpack.c.bf16 (!%p760_p3), %v359_v30, %v357_v29  ;;  %v358_v38 = vld [vmem:[%s1417_s15 + $0x90] sm:$0xff] (!%p760_p3) }
  0x92   : > { %v455_v34 = vsel (!%p760_p3), %vm1469_vm0, %v449_v31, 0.0  ;;  %v456_v35 = vsel (!%p760_p3), %vm1469_vm0, %v450_v32, 0.0  ;;  %v356_v37 = vld [vmem:[%s1417_s15 + $0x80] sm:$0xff] (!%p760_p3)  ;;  %v361_v40 = vld [vmem:[%s1417_s15 + $0xa8] sm:$0xff] (!%p760_p3)  ;;  %v363_v41 = vld [vmem:[%s1417_s15 + $0xb8] sm:$0xff] (!%p760_p3) }
  0x93   : > { %811 = vmatpush1.bf16.msra.mxu0 %v810_v16  ;;  %v458_v39 = vsel %vm457_vm1, %v455_v34, 0.0  ;;  %v461_v42 = vsel %vm457_vm1, %v456_v35, 0.0  ;;  %v822_v43 = vpack.c.bf16 %v358_v38, %v356_v37  ;;  %v824_v44 = vpack.c.bf16 %v363_v41, %v361_v40  ;;  %v360_v45 = vld [vmem:[%s1417_s15 + $0xa0] sm:$0xff]  ;;  %v362_v46 = vld [vmem:[%s1417_s15 + $0xb0] sm:$0xff]  ;;  %v365_v47 = vld [vmem:[%s1417_s15 + $0xc8] sm:$0xff] }
  0x94   : > { %813 = vmatprep.subr.bf16.mxu0 %v812_v17  ;;  %459 = vadd.xlane.f32.xlu0 %v458_v39  ;;  %v367_v48 = vld [vmem:[%s1417_s15 + $0xd8] sm:$0xff]  ;;  %v826_v49 = vpack.c.bf16 %v362_v46, %v360_v45  ;;  %v364_v51 = vld [vmem:[%s1417_s15 + $0xc0] sm:$0xff]  ;;  %v366_v52 = vld [vmem:[%s1417_s15 + $0xd0] sm:$0xff] }
  0x95   : > { %v828_v50 = vpack.c.bf16 %v367_v48, %v365_v47  ;;  %v369_v53 = vld [vmem:[%s1417_s15 + $0xe8] sm:$0xff]  ;;  %v371_v54 = vld [vmem:[%s1417_s15 + $0xf8] sm:$0xff]  ;;  %v830_v55 = vpack.c.bf16 %v366_v52, %v364_v51  ;;  %v368_v57 = vld [vmem:[%s1417_s15 + $0xe0] sm:$0xff] }
  0x96   : > { %v832_v56 = vpack.c.bf16 %v371_v54, %v369_v53  ;;  %v370_v58 = vld [vmem:[%s1417_s15 + $0xf0] sm:$0xff]  ;;  %v338_v60 = vld [vmem:[%s1436_s17] sm:$0xff]  ;;  %v339_v61 = vld [vmem:[%s1436_s17 + $0x8] sm:$0xff] }
  0x97   : > { %815 = vmatpush1.bf16.msra.mxu0 %v814_v24  ;;  %v834_v59 = vpack.c.bf16 %v370_v58, %v368_v57  ;;  %v501_v62 = vld [vmem:[%s1423_s21] sm:$0xff]  ;;  %v502_v63 = vld [vmem:[%s1423_s21 + $0x8] sm:$0xff]  ;;  %v503_v0 = vld [vmem:[%s1423_s21 + $0x10] sm:$0xff] }
  0x98   : > { %817 = vmatprep.subr.bf16.mxu0 %v816_v25  ;;  %462 = vadd.xlane.f32.xlu0 %v461_v42  ;;  %v836_v1 = vpack.c.bf16 %v502_v63, %v501_v62  ;;  %v504_v2 = vld [vmem:[%s1423_s21 + $0x18] sm:$0xff]  ;;  %v505_v4 = vld [vmem:[%s1423_s21 + $0x20] sm:$0xff]  ;;  %v506_v5 = vld [vmem:[%s1423_s21 + $0x28] sm:$0xff] }
  0x99   : > { %v840_v3 = vpack.c.bf16 %v504_v2, %v503_v0  ;;  %v844_v6 = vpack.c.bf16 %v506_v5, %v505_v4  ;;  %v507_v7 = vld [vmem:[%s1423_s21 + $0x30] sm:$0xff]  ;;  %v509_v10 = vld [vmem:[%s1423_s21 + $0x40] sm:$0xff] }
  0x9a   : > { %837 = vmatprep.subr.bf16.mxu1 %v836_v1  ;;  %v511_v37 = vld [vmem:[%s1443_s25 + $0x8] sm:$0xff]  ;;  %v510_v38 = vld [vmem:[%s1443_s25] sm:$0xff] }
  0x9b   : > { %819 = vmatpush1.bf16.msra.mxu0 %v818_v33  ;;  %839 = vmatpush3.bf16.msra.mxu1 %v836_v1 }
  0x9c   : > { %821 = vmatprep.subr.bf16.mxu0 %v820_v36  ;;  %841 = vmatprep.subr.bf16.mxu1 %v840_v3 }
  0x9f   : > { %823 = vmatpush1.bf16.msra.mxu0 %v822_v43  ;;  %843 = vmatpush3.bf16.msra.mxu1 %v840_v3 }
  0xa0   : > { %825 = vmatprep.subr.bf16.mxu0 %v824_v44  ;;  %845 = vmatprep.subr.bf16.mxu1 %v844_v6 }
  0xa3   : > { %827 = vmatpush1.bf16.msra.mxu0 %v826_v49  ;;  %847 = vmatpush3.bf16.msra.mxu1 %v844_v6 }
  0xa4   : > { %829 = vmatprep.subr.bf16.mxu0 %v828_v50 }
  0xa7   : > { %831 = vmatpush1.bf16.msra.mxu0 %v830_v55 }
  0xa8   : > { %833 = vmatprep.subr.bf16.mxu0 %v832_v56 }
  0xab   : > { %835 = vmatpush1.bf16.msra.mxu0 %v834_v59 }
  0xae   : > { %437 = vmatmul.mubr.f32.vlgmr.msra.gmra.mrb[0].mxu0 %v338_v60 }
  0xaf   : > { %442 = vmatprep.mubr.f32.mxu0 %v1190_v8  ;;  %v508_v8 = vld [vmem:[%s1423_s21 + $0x38] sm:$0xff] }
  0xb0   : > { %v848_v9 = vpack.c.bf16 %v508_v8, %v507_v7 }
  0xb2   : > { %443 = vmatmul.mubr.f32.gmra.mrb[2].mxu0 %v339_v61  ;;  %849 = vmatprep.subr.bf16.mxu1 %v848_v9 }
  0xb3   : > { %851 = vmatpush3.bf16.msra.mxu1 %v848_v9 }
  0xb4   : > { %799 = vmatprep.subr.mxu1 %v509_v10 }
  0xb7   : > { %800 = vmatpush3.msra.mxu1 %v509_v10 }
 0x121   : > { %v460_v21 = vpop.xlane.xlu0 %459 }
 0x125   : > { %v463_v22 = vpop.xlane.xlu0 %462 }
 0x181   : > { %v438_v11 = vpop.f32.mrb[0].mxu0 }
 0x182   : > { %480 = vrot.lane.b32.xlu1 %v438_v11, %s1191_s28  ;;  %v440_v12 = vpop.f32.mrb[1].mxu0  ;;  %v761_v15 = vmul.f32 -1.442695, %v438_v11 }
 0x183   : > { %490 = vrot.lane.b32.xlu0 %v440_v12, %s1191_s28 }
 0x184   : > { %972 = vpow2.f32 %v761_v15 }
 0x185   : > { %v444_v13 = vpop.f32.mrb[2].mxu0 }
 0x186   : > { %482 = vrot.lane.b32.xlu1 %v444_v13, %s1191_s28  ;;  %v446_v14 = vpop.f32.mrb[3].mxu0  ;;  %v762_v16 = vmul.f32 -1.442695, %v444_v13 }
 0x188   : > { %974 = vpow2.f32 %v762_v16 }
 0x18a   : > { %492 = vrot.lane.b32.xlu1 %v446_v14, %s1191_s28 }
 0x18e   : > { %v973_v17 = vpop.eup %972 }
 0x18f   : > { %v470_v18 = vadd.f32 1.0, %v973_v17 }
 0x191   : > { %976 = vrcp.f32 %v470_v18 }
 0x192   : > { %v975_v19 = vpop.eup %974 }
 0x193   : > { %v471_v20 = vadd.f32 1.0, %v975_v19 }
 0x195   : > { %978 = vrcp.f32 %v471_v20 }
 0x19b   : > { %v977_v23 = vpop.eup %976 }
 0x19c   : > { %v476_v24 = vmul.f32 %v977_v23, %v438_v11 }
 0x19f   : > { %v979_v28 = vpop.eup %978 }
 0x1a0   : > { %v477_v32 = vmul.f32 %v979_v28, %v444_v13 }
 0x1f4   : > { %v481_v25 = vpop.permute.xlu1 %480 }
 0x1f5   : > { %v486_v26 = vmul.f32 %v481_v25, %v476_v24  ;;  %v491_v27 = vpop.permute.xlu0 %490 }
 0x1f7   : > { %v497_v29 = vsel %vm496_vm2, %v486_v26, %v491_v27 }
 0x1f8   : > { %v483_v30 = vpop.permute.xlu1 %482  ;;  %v499_v31 = vmul.f32 %v497_v29, %v460_v21 }
 0x1f9   : > { %v487_v33 = vmul.f32 %v483_v30, %v477_v32 }
 0x1fa   : > { %801 = vmatprep.mubr.msk.f32.mxu1 %vm512_vm3, %v499_v31 }
 0x1fc   : > { %v493_v34 = vpop.permute.xlu1 %492 }
 0x1fd   : > { %v498_v35 = vsel %vm496_vm2, %v487_v33, %v493_v34 }
 0x1fe   : > { %v500_v36 = vmul.f32 %v498_v35, %v463_v22 }
 0x200   : > { %802 = vmatmul.mubr.msk.f32.vlgmr.msra.gmra.mrb[0].mxu1 %vm512_vm3, %v500_v36 }
 0x2d3   : > { %v803_v39 = vpop.f32.mrb[0].mxu1 }
 0x2d4   : > { %v595_v40 = vadd.f32 %v803_v39, %v511_v37  ;;  %v585_v41 = vpop.f32.mrb[1].mxu1 }
 0x2d5   : > { %v594_v42 = vadd.f32 %v585_v41, %v510_v38 }
 0x2d6   : > { %597 = vst [vmem:[%s1443_s25 + $0x8] sm:$0xff] %v595_v40 }
 0x2d7   : > { %596 = vst [vmem:[%s1443_s25] sm:$0xff] %v594_v42 }
 0x2d8 PF: > { %s771_s15 = sshll.u32 %s1168_s29, 8  ;;  %s612_s17 = sshll.u32 %s1443_s25, 4  ;;  %s1518_s17 = int_to_ptr.vmem [resolvable:$true] %s612_s17 }
 0x2d9   : > { %s1515_s18 = scalar_lea.hbm %s1588_s5, %s771_s15  ;;  %s1522_s6 = scalar_lea.sflag [#allocation6], %s304_s2 }
 0x2da   : > { %s1052_s14 = scalar_lea.vmem %s1518_s17, 256  ;;  %p1611_p1 = scmp.ne.s32.totalorder %s1603_s20, 0 }
 0x2db   : > { %p1053_p6 = scmp.ne.s32.totalorder %s1518_s17, %s1052_s14  ;;  %s1192_s29 = smov [#allocation9]  }
 0x2dc   : > { %s1056_s16 = sshll.u32 %s1192_s29, 4  ;;  %s1057_s16 = int_to_ptr.vmem [resolvable:$false] %s1056_s16 }
 0x2dd   : > { %p1054_p2 = pnand %p1053_p6, %p1611_p1  ;;  %s1058_s12 = scalar_lea.vmem %s1057_s16, 512 }
 0x2de   : > { %p1059_p4 = scmp.lt.s32.totalorder %s1518_s17, %s1057_s16  ;;  %p1060_p7 = scmp.lt.s32.totalorder %s1058_s12, %s1052_s14 }
 0x2df   : > { %p1055_p0 = pneg %p1054_p2 }
 0x2e0   : > { %p1061_p5 = por %p1060_p7, %p1059_p4 }
 0x2e2   : > { %p1062_p10 = pnand %p1061_p5, %p1055_p0 }
 0x2e4   : > { %1065 = shalt.err (!%p1062_p10)
}
 0x2e5   : > { %s1066_s2 = scalar_lea.hbm %s1515_s18, 256  ;;  %s1070_s11 = scalar_lea.hbm %s1588_s5, 512 }
 0x2e6   : > { %p1067_p12 = scmp.ne.s32.totalorder %s1515_s18, %s1066_s2  ;;  %p1071_p9 = scmp.lt.u32.totalorder %s1515_s18, %s1588_s5 }
 0x2e7   : > { %p1072_p11 = scmp.lt.u32.totalorder %s1070_s11, %s1066_s2  ;;  %p1074_p6 = scmp.lt.u32.totalorder %s1066_s2, %s1515_s18 }
 0x2e8   : > { %p1068_p8 = pnand %p1067_p12, %p1611_p1 }
 0x2e9   : > { %p1073_p3 = por %p1072_p11, %p1071_p9 }
 0x2ea   : > { %p1069_p13 = pneg %p1068_p8 }
 0x2eb   : > { %p1075_p2 = por %p1074_p6, %p1073_p3 }
 0x2ed   : > { %p1076_p0 = pnand %p1075_p2, %p1069_p13 }
 0x2ef   : > { %1079 = shalt.err (!%p1076_p0)
}
 0x2f0   : > { %s1193_s8 = smov 128   ;;  %s1194_s28 = smov 8  }
 0x2f1   : > { %859 = dma.vmem_to_hbm [thread:$0]  (%p1611_p1), %s1518_s17, 256, %s1515_s18, %s1522_s6, %s1193_s8, %s1193_s8, %s1194_s28  }
 0x2f2 PF: > { %p873_p4 = scmp.ge.s32.totalorder %s1180_s7, 2  ;;  %s627_s15 = sand.u32 1, %s1140_s0  }
 0x2f3   : > { %p1612_p7 = scmp.ne.s32.totalorder %s1604_s22, 0  ;;  %s628_s21 = scalar_lea.sflag [#allocation6], %s627_s15 }
 0x2f5   : > { %p869_p5 = pnand %p873_p4, %p1612_p7 }
 0x2f7   : > { %1135 = dma.done.wait (!%p869_p5), %s628_s21, 256  }
 0x2f8   : > { %1137 = vsyncadd (!%p869_p5), %s628_s21, 4294967040  ;;  %s30_s7 = sadd.s32 1, %s1180_s7   ;;  %s1613_s20 = sld [smem:[#allocation14_spill]] }
 0x2f9   : > { %p27_p10 = scmp.ge.s32.totalorder %s30_s7, 10   ;;  %s1614_s27 = sld [smem:[#allocation18_spill]] }
 0x2fa   : > { %s1615_s29 = sld [smem:[#allocation15_spill]]  ;;  %s1616_s9 = sld [smem:[#allocation16_spill]] }
 0x2fb   : > { %s1617_s6 = sld [smem:[#allocation17_spill]]  ;;  %s1618_s0 = smov %s1144_s23 }
 0x2fc   : > { %s1619_s23 = smov %s1148_s24  ;;  %s1620_s24 = smov %s1314_s19 }
 0x2fd   : > { %s1621_s25 = smov %s1156_s26  ;;  %s1623_s28 = smov %s1172_s30 }
 0x2fe   : > { %s1622_s26 = smov %s1613_s20  ;;  %29 = sbr.rel (!%p27_p10) target bundleno = 26 (0x1a), region = 108 }
 0x300   : > { %s1624_s30 = smov %s1616_s9 }
 0x305   :  { %633 = vsyncpa [#allocation5], 1 }
 0x306   :  { %635 = vsyncpa [#allocation5 + $0x1], 1 }
 0x307   :  { %636 = vsyncpa [#allocation8], 1 }
 0x308   :  { %638 = vsyncpa [#allocation8 + $0x1], 1 }
 0x309   :  { %639 = vsyncpa [#allocation6], 1 }
 0x30a   :  { %641 = vsyncpa [#allocation6 + $0x1], 1 }

</bundles_post_ra>
